<compile_context>
chip_gen: v7x
topology: tpu7x:2x2x1
jax: 0.10.0
libtpu: 0.0.40
codegen_flags: <defaults>
</compile_context>

<pallas_src>
import jax
import jax.numpy as jnp
from jax.experimental import pallas as pl
from jax.experimental.pallas import tpu as pltpu


# ----------------------------------------------------------------------------
# GRU input projection: one big (T*B, E) x (E, 3H) matmul (off the recurrence).
# ----------------------------------------------------------------------------
def gru_in_proj_kernel(x_ref, w_ref, b_ref, o_ref):
    x = x_ref[...].astype(jnp.bfloat16)
    o_ref[...] = (jnp.dot(x, w_ref[...], preferred_element_type=jnp.float32)
                  + b_ref[...]).astype(o_ref.dtype)


def gru_input_projection(x_tbe, w_ih, b_ih, row_block=512):
    """x_tbe: (T, B, E) time-major embeddings. Returns gi: (T, B, 3H) f32."""
    T, B, E = x_tbe.shape
    G = w_ih.shape[-1]                       # 3*H
    rows = T * B
    x2d = x_tbe.reshape(rows, E)
    tr = rows if rows <= row_block else row_block
    assert rows % tr == 0, "row tile must divide T*B"
    gi2d = pl.pallas_call(
        gru_in_proj_kernel,
        out_shape=jax.ShapeDtypeStruct((rows, G), jnp.float32),
        grid_spec=pltpu.PrefetchScalarGridSpec(
            num_scalar_prefetch=0,
            grid=(rows // tr,),
            in_specs=[
                pl.BlockSpec((tr, E), lambda i: (i, 0)),
                pl.BlockSpec((E, G), lambda i: (0, 0)),
                pl.BlockSpec((1, G), lambda i: (0, 0)),
            ],
            out_specs=pl.BlockSpec((tr, G), lambda i: (i, 0)),
        ),
        compiler_params=pltpu.CompilerParams(
            dimension_semantics=("parallel",),
            vmem_limit_bytes=48 * 1024 * 1024),
    )(x2d, w_ih, b_ih)
    return gi2d.reshape(T, B, G)


# ----------------------------------------------------------------------------
# GRU recurrence: grid over time; only h @ W_hh inside the serial loop.
# ----------------------------------------------------------------------------
def gru_kernel(gi_ref, whh_ref, bhh_ref, out_ref, h_ref):
    t = pl.program_id(0)

    @pl.when(t == 0)
    def _():
        h_ref[...] = jnp.zeros_like(h_ref)

    h = h_ref[...]                           # (B, H) f32
    H = h.shape[-1]
    gi = gi_ref[0]                           # (B, 3H) f32, precomputed x@W_ih+b_ih
    gh = jnp.dot(h.astype(jnp.bfloat16), whh_ref[...],
                 preferred_element_type=jnp.float32) + bhh_ref[...]   # (B, 3H)

    # Gate slices are lane-aligned whenever H % 128 == 0 (production num_hid).
    i_r, i_z, i_n = gi[:, :H], gi[:, H:2 * H], gi[:, 2 * H:]
    h_r, h_z, h_n = gh[:, :H], gh[:, H:2 * H], gh[:, 2 * H:]

    r = jax.nn.sigmoid(i_r + h_r)
    z = jax.nn.sigmoid(i_z + h_z)
    n = jnp.tanh(i_n + r * h_n)              # b_hh_n folded into h_n (PyTorch GRU)
    h_new = (1.0 - z) * n + z * h
    h_ref[...] = h_new

    @pl.when(t == pl.num_programs(0) - 1)
    def _():
        out_ref[...] = h_new


def gru_last_hidden(gi, w_hh, b_hh):
    T, B, G = gi.shape
    H = w_hh.shape[0]
    return pl.pallas_call(
        gru_kernel,
        out_shape=jax.ShapeDtypeStruct((B, H), jnp.float32),
        grid_spec=pltpu.PrefetchScalarGridSpec(
            num_scalar_prefetch=0,
            grid=(T,),
            in_specs=[
                pl.BlockSpec((1, B, G), lambda t: (t, 0, 0)),
                pl.BlockSpec((H, G), lambda t: (0, 0)),   # loop-invariant
                pl.BlockSpec((1, G), lambda t: (0, 0)),   # loop-invariant
            ],
            out_specs=pl.BlockSpec((B, H), lambda t: (0, 0)),
            scratch_shapes=[pltpu.VMEM((B, H), jnp.float32)],
        ),
        compiler_params=pltpu.CompilerParams(
            dimension_semantics=("arbitrary",),
            vmem_limit_bytes=48 * 1024 * 1024),
    )(gi, w_hh, b_hh)


# ----------------------------------------------------------------------------
# Fused head kernel (gridded over batch):
#   attention + pooling + FCNets + fusion + classifier.
# ----------------------------------------------------------------------------
def head_kernel(v_ref, q_ref,
                av_w, av_b, aq_w, aq_b, al_w, al_b,
                qn_w, qn_b, vn_w, vn_b, un_w, un_b,
                c1a_w, c1b_w, c1_b, c2_w, c2_b,
                out_ref):
    v = v_ref[...]                            # (TB, N, D) f32
    q = q_ref[...]                            # (TB, H)    f32
    TB, N, D = v.shape
    H = q.shape[-1]
    qb = q.astype(jnp.bfloat16)

    # --- v_att: FCNet(v) * FCNet(q) -> lane reduce -> softmax over objects ---
    # NOTE: for production N not a multiple of 8 the (TB*N, D) merge costs a
    # relayout; acceptable, and exact either way.
    v2 = v.reshape(TB * N, D).astype(jnp.bfloat16)
    v_proj = jax.nn.relu(
        jnp.dot(v2, av_w[...], preferred_element_type=jnp.float32)
        + av_b[...]).reshape(TB, N, H)
    q_proj = jax.nn.relu(
        jnp.dot(qb, aq_w[...], preferred_element_type=jnp.float32) + aq_b[...])
    joint = v_proj * q_proj[:, None, :]                        # (TB, N, H)
    # width-1 matmul replaced by VPU multiply + lane reduction -> (TB, N)
    logits = jnp.sum(joint * al_w[...], axis=-1) + al_b[...]   # (TB, N)
    m = jnp.max(logits, axis=-1, keepdims=True)
    e = jnp.exp(logits - m)
    att = e * pl.reciprocal(jnp.sum(e, axis=-1, keepdims=True), approx=False)

    # --- pooled visual features (single read of the v tile) ---
    v_emb = jnp.sum(att[:, :, None] * v, axis=1)               # (TB, D) top-down
    u_emb = jnp.sum(v, axis=1) * (1.0 / N)                     # (TB, D) bottom-up

    # --- FCNets ---
    q_repr = jax.nn.relu(
        jnp.dot(qb, qn_w[...], preferred_element_type=jnp.float32) + qn_b[...])
    v_td = jax.nn.relu(
        jnp.dot(v_emb.astype(jnp.bfloat16), vn_w[...],
                preferred_element_type=jnp.float32) + vn_b[...])
    v_bu = jax.nn.relu(
        jnp.dot(u_emb.astype(jnp.bfloat16), un_w[...],
                preferred_element_type=jnp.float32) + un_b[...])

    joint_td = q_repr * v_td
    joint_bu = q_repr * v_bu

    # --- classifier: split W1 to avoid the lane-dim concatenate ---
    hid = jax.nn.relu(
        jnp.dot(joint_td.astype(jnp.bfloat16), c1a_w[...],
                preferred_element_type=jnp.float32)
        + jnp.dot(joint_bu.astype(jnp.bfloat16), c1b_w[...],
                  preferred_element_type=jnp.float32)
        + c1_b[...])
    out_ref[...] = (jnp.dot(hid.astype(jnp.bfloat16), c2_w[...],
                            preferred_element_type=jnp.float32)
                    + c2_b[...]).astype(out_ref.dtype)


def head_call(v, q_emb, params, num_ans_p, block_b=None):
    B, N, D = v.shape
    H = q_emb.shape[-1]
    TB = B if block_b is None else block_b
    assert B % TB == 0, "batch tile must divide batch"
    weights = (params["av_w"], params["av_b"], params["aq_w"], params["aq_b"],
               params["al_w"], params["al_b"],
               params["qn_w"], params["qn_b"], params["vn_w"], params["vn_b"],
               params["un_w"], params["un_b"],
               params["c1a_w"], params["c1b_w"], params["c1_b"],
               params["c2_w"], params["c2_b"])
    # Weights/biases: full blocks, constant index maps -> resident across grid.
    w_specs = [pl.BlockSpec(w.shape, (lambda i, nd=w.ndim: (0,) * nd))
               for w in weights]
    return pl.pallas_call(
        head_kernel,
        out_shape=jax.ShapeDtypeStruct((B, num_ans_p), jnp.float32),
        grid_spec=pltpu.PrefetchScalarGridSpec(
            num_scalar_prefetch=0,
            grid=(B // TB,),
            in_specs=[pl.BlockSpec((TB, N, D), lambda i: (i, 0, 0)),
                      pl.BlockSpec((TB, H), lambda i: (i, 0))] + w_specs,
            out_specs=pl.BlockSpec((TB, num_ans_p), lambda i: (i, 0)),
        ),
        compiler_params=pltpu.CompilerParams(
            dimension_semantics=("parallel",),
            vmem_limit_bytes=48 * 1024 * 1024),
    )(v, q_emb, *weights)


# ----------------------------------------------------------------------------
# Full forward: mirrors BaseModel.forward(v, b, q, labels)
# ----------------------------------------------------------------------------
def base_model_forward(v, b, q, labels, params, num_ans):
    del b, labels  # unused by the reference forward pass
    # TODO(synk): embedding gather stays in plain JAX (XLA); a Pallas DMA
    # gather kernel is possible but not implemented.
    # Gather directly into time-major layout by transposing the tiny int32 id
    # matrix (avoids materializing a transposed copy of the embedded sequence).
    w_emb_t = jnp.take(params["emb_table"], q.T, axis=0)      # (T, B, E)
    # Hoisted input projection (one big matmul), then the serial recurrence.
    gi = gru_input_projection(w_emb_t, params["gru_wih"], params["gru_bih"])
    q_emb = gru_last_hidden(gi, params["gru_whh"], params["gru_bhh"])
    # Fused attention / pooling / nets / classifier, gridded over batch.
    num_ans_p = params["c2_w"].shape[-1]
    logits_p = head_call(v, q_emb, params, num_ans_p)
    return logits_p[:, :num_ans]


# ----------------------------------------------------------------------------
# Deterministic synthetic parameters (weight_norm folded into plain weights).
# Matmul weights stored bf16 (f32 accumulate in-kernel); biases f32.
# ----------------------------------------------------------------------------
def init_params(key, vocab, emb_dim, num_hid, obj_dim, cls_hid,
                num_ans, num_ans_p):
    ks = jax.random.split(key, 24)
    s = 0.05
    f32 = lambda k, shp: (s * jax.random.normal(k, shp)).astype(jnp.float32)
    bf = lambda k, shp: f32(k, shp).astype(jnp.bfloat16)
    c2_w = jnp.pad(f32(ks[19], (cls_hid, num_ans)),
                   ((0, 0), (0, num_ans_p - num_ans))).astype(jnp.bfloat16)
    c2_b = jnp.pad(f32(ks[20], (1, num_ans)),
                   ((0, 0), (0, num_ans_p - num_ans)))
    return {
        "emb_table": f32(ks[0], (vocab, emb_dim)),
        "gru_wih": bf(ks[1], (emb_dim, 3 * num_hid)),
        "gru_whh": bf(ks[2], (num_hid, 3 * num_hid)),
        "gru_bih": f32(ks[3], (1, 3 * num_hid)),
        "gru_bhh": f32(ks[4], (1, 3 * num_hid)),
        # v_att
        "av_w": bf(ks[5], (obj_dim, num_hid)), "av_b": f32(ks[6], (1, num_hid)),
        "aq_w": bf(ks[7], (num_hid, num_hid)), "aq_b": f32(ks[8], (1, num_hid)),
        "al_w": f32(ks[9], (1, 1, num_hid)),   "al_b": f32(ks[10], (1, 1)),
        # q_net / v_net / u_net
        "qn_w": bf(ks[11], (num_hid, num_hid)), "qn_b": f32(ks[12], (1, num_hid)),
        "vn_w": bf(ks[13], (obj_dim, num_hid)), "vn_b": f32(ks[14], (1, num_hid)),
        "un_w": bf(ks[15], (obj_dim, num_hid)), "un_b": f32(ks[16], (1, num_hid)),
        # classifier (W1 split into td / bu halves to avoid the lane concat)
        "c1a_w": bf(ks[17], (num_hid, cls_hid)),
        "c1b_w": bf(ks[21], (num_hid, cls_hid)),
        "c1_b": f32(ks[18], (1, cls_hid)),
        "c2_w": c2_w, "c2_b": c2_b,            # padded to num_ans_p lanes
    }


if __name__ == "__main__":
    # small shapes consistent with the forward signature
    batch, num_objs, obj_dim, b_dim = 2, 8, 64, 4
    seq_len, vocab, emb_dim = 8, 50, 32
    num_hid, cls_hid, num_ans = 32, 64, 16
    num_ans_p = ((num_ans + 127) // 128) * 128   # lane-dense output width

    key = jax.random.PRNGKey(0)
    k_v, k_b, k_q, k_p = jax.random.split(key, 4)

    v = jax.random.normal(k_v, (batch, num_objs, obj_dim), dtype=jnp.float32)
    b = jax.random.normal(k_b, (batch, num_objs, b_dim), dtype=jnp.float32)
    q = jax.random.randint(k_q, (batch, seq_len), 0, vocab, dtype=jnp.int32)
    labels = jnp.zeros((batch, num_ans), dtype=jnp.float32)  # unused, as in torch

    params = init_params(k_p, vocab, emb_dim, num_hid, obj_dim, cls_hid,
                         num_ans, num_ans_p)

    fwd = jax.jit(lambda v, b, q, labels:
                  base_model_forward(v, b, q, labels, params, num_ans))
    logits = jax.block_until_ready(fwd(v, b, q, labels))

    assert logits.shape == (batch, num_ans)
    assert bool(jnp.all(jnp.isfinite(logits)))
    print("KERNEL_OK")
</pallas_src>

<mosaic_0001>
module attributes {stable_mosaic.version = 11 : i64} {
  func.func @gru_kernel(%arg0: i32, %arg1: memref<1x2x96xf32, #tpu.memory_space<vmem>>, %arg2: memref<32x96xbf16, #tpu.memory_space<vmem>>, %arg3: memref<1x96xf32, #tpu.memory_space<vmem>>, %arg4: memref<2x32xf32, #tpu.memory_space<vmem>>, %arg5: memref<2x32xf32, #tpu.memory_space<vmem>>) attributes {dimension_semantics = [#tpu.dimension_semantics<arbitrary>], iteration_bounds = array<i64: 8>, scalar_prefetch = 0 : i64, scratch_operands = 1 : i64, tpu.core_type = #tpu.core_type<tc>, window_params = [{transform_indices = @transform_0, window_bounds = array<i64: 1, 2, 96>}, {pipeline_mode = #tpu.pipeline_mode<synchronous>, transform_indices = @transform_1, window_bounds = array<i64: 32, 96>}, {pipeline_mode = #tpu.pipeline_mode<synchronous>, transform_indices = @transform_2, window_bounds = array<i64: 1, 96>}, {pipeline_mode = #tpu.pipeline_mode<synchronous>, transform_indices = @transform_3, window_bounds = array<i64: 2, 32>}]} {
    %c0_i32 = arith.constant 0 : i32
    %0 = arith.cmpi eq, %arg0, %c0_i32 : i32
    %1 = arith.extui %0 : i1 to i32
    %c0_i32_0 = arith.constant 0 : i32
    %2 = arith.cmpi ne, %1, %c0_i32_0 : i32
    scf.if %2 {
      %cst_15 = arith.constant 0.000000e+00 : f32
      %42 = vector.broadcast %cst_15 : f32 to vector<2x32xf32>
      %c0_16 = arith.constant 0 : index
      %c0_17 = arith.constant 0 : index
      %43 = vector.load %arg5[%c0_16, %c0_17] : memref<2x32xf32, #tpu.memory_space<vmem>>, vector<2x32xf32>
      tpu.vector_store %arg5[%c0_16, %c0_17], %42 {strides = array<i32>} : memref<2x32xf32, #tpu.memory_space<vmem>>, vector<2x32xf32>,
    } else {
    }
    %c0 = arith.constant 0 : index
    %c0_1 = arith.constant 0 : index
    %3 = vector.load %arg5[%c0, %c0_1] : memref<2x32xf32, #tpu.memory_space<vmem>>, vector<2x32xf32>
    %c0_2 = arith.constant 0 : index
    %c0_3 = arith.constant 0 : index
    %c0_4 = arith.constant 0 : index
    %4 = vector.load %arg1[%c0_2, %c0_3, %c0_4] : memref<1x2x96xf32, #tpu.memory_space<vmem>>, vector<1x2x96xf32>
    %5 = vector.shape_cast %4 : vector<1x2x96xf32> to vector<2x96xf32>
    %6 = arith.truncf %3 : vector<2x32xf32> to vector<2x32xbf16>
    %c0_5 = arith.constant 0 : index
    %c0_6 = arith.constant 0 : index
    %7 = vector.load %arg2[%c0_5, %c0_6] : memref<32x96xbf16, #tpu.memory_space<vmem>>, vector<32x96xbf16>
    %cst = arith.constant dense<0.000000e+00> : vector<2x96xf32>
    %8 = tpu.matmul %6, %7, %cst {dimension_numbers = #tpu.dot_dimension_numbers<[1], [0], [0], [1], [0, 0, 1, 1], [], []>} : vector<2x32xbf16>, vector<32x96xbf16>, vector<2x96xf32> -> vector<2x96xf32>
    %c0_7 = arith.constant 0 : index
    %c0_8 = arith.constant 0 : index
    %9 = vector.load %arg3[%c0_7, %c0_8] : memref<1x96xf32, #tpu.memory_space<vmem>>, vector<1x96xf32>
    %10 = vector.broadcast %9 : vector<1x96xf32> to vector<2x96xf32>
    %11 = arith.addf %8, %10 : vector<2x96xf32>
    %12 = vector.extract_strided_slice %5 {offsets = [0, 0], sizes = [2, 32], strides = [1, 1]} : vector<2x96xf32> to vector<2x32xf32>
    %13 = vector.extract_strided_slice %5 {offsets = [0, 32], sizes = [2, 32], strides = [1, 1]} : vector<2x96xf32> to vector<2x32xf32>
    %14 = vector.extract_strided_slice %5 {offsets = [0, 64], sizes = [2, 32], strides = [1, 1]} : vector<2x96xf32> to vector<2x32xf32>
    %15 = vector.extract_strided_slice %11 {offsets = [0, 0], sizes = [2, 32], strides = [1, 1]} : vector<2x96xf32> to vector<2x32xf32>
    %16 = vector.extract_strided_slice %11 {offsets = [0, 32], sizes = [2, 32], strides = [1, 1]} : vector<2x96xf32> to vector<2x32xf32>
    %17 = vector.extract_strided_slice %11 {offsets = [0, 64], sizes = [2, 32], strides = [1, 1]} : vector<2x96xf32> to vector<2x32xf32>
    %18 = arith.addf %12, %15 : vector<2x32xf32>
    %19 = arith.negf %18 : vector<2x32xf32>
    %20 = math.exp %19 : vector<2x32xf32>
    %cst_9 = arith.constant 1.000000e+00 : f32
    %21 = vector.broadcast %cst_9 : f32 to vector<2x32xf32>
    %22 = arith.addf %21, %20 : vector<2x32xf32>
    %23 = arith.divf %21, %22 : vector<2x32xf32>
    %24 = arith.addf %13, %16 : vector<2x32xf32>
    %25 = arith.negf %24 : vector<2x32xf32>
    %26 = math.exp %25 : vector<2x32xf32>
    %cst_10 = arith.constant 1.000000e+00 : f32
    %27 = vector.broadcast %cst_10 : f32 to vector<2x32xf32>
    %28 = arith.addf %27, %26 : vector<2x32xf32>
    %29 = arith.divf %27, %28 : vector<2x32xf32>
    %30 = arith.mulf %23, %17 : vector<2x32xf32>
    %31 = arith.addf %14, %30 : vector<2x32xf32>
    %32 = math.tanh %31 : vector<2x32xf32>
    %cst_11 = arith.constant 1.000000e+00 : f32
    %33 = vector.broadcast %cst_11 : f32 to vector<2x32xf32>
    %34 = arith.subf %33, %29 : vector<2x32xf32>
    %35 = arith.mulf %34, %32 : vector<2x32xf32>
    %36 = arith.mulf %29, %3 : vector<2x32xf32>
    %37 = arith.addf %35, %36 : vector<2x32xf32>
    %c0_12 = arith.constant 0 : index
    %c0_13 = arith.constant 0 : index
    %38 = vector.load %arg5[%c0_12, %c0_13] : memref<2x32xf32, #tpu.memory_space<vmem>>, vector<2x32xf32>
    tpu.vector_store %arg5[%c0_12, %c0_13], %37 {strides = array<i32>} : memref<2x32xf32, #tpu.memory_space<vmem>>, vector<2x32xf32>,
    %c7_i32 = arith.constant 7 : i32
    %39 = arith.cmpi eq, %arg0, %c7_i32 : i32
    %40 = arith.extui %39 : i1 to i32
    %c0_i32_14 = arith.constant 0 : i32
    %41 = arith.cmpi ne, %40, %c0_i32_14 : i32
    scf.if %41 {
      %c0_15 = arith.constant 0 : index
      %c0_16 = arith.constant 0 : index
      %42 = vector.load %arg4[%c0_15, %c0_16] : memref<2x32xf32, #tpu.memory_space<vmem>>, vector<2x32xf32>
      tpu.vector_store %arg4[%c0_15, %c0_16], %37 {strides = array<i32>} : memref<2x32xf32, #tpu.memory_space<vmem>>, vector<2x32xf32>,
    } else {
    }
    return
  }
  func.func @transform_0(%arg0: i32) -> (i32, i32, i32) {
    %c0_i32 = arith.constant 0 : i32
    %c0_i32_0 = arith.constant 0 : i32
    %c0_i32_1 = arith.constant 0 : i32
    return %arg0, %c0_i32, %c0_i32_0 : i32, i32, i32
  }
  func.func @transform_1(%arg0: i32) -> (i32, i32) {
    %c0_i32 = arith.constant 0 : i32
    %c0_i32_0 = arith.constant 0 : i32
    %c0_i32_1 = arith.constant 0 : i32
    return %c0_i32, %c0_i32_0 : i32, i32
  }
  func.func @transform_2(%arg0: i32) -> (i32, i32) {
    %c0_i32 = arith.constant 0 : i32
    %c0_i32_0 = arith.constant 0 : i32
    %c0_i32_1 = arith.constant 0 : i32
    return %c0_i32, %c0_i32_0 : i32, i32
  }
  func.func @transform_3(%arg0: i32) -> (i32, i32) {
    %c0_i32 = arith.constant 0 : i32
    %c0_i32_0 = arith.constant 0 : i32
    %c0_i32_1 = arith.constant 0 : i32
    return %c0_i32, %c0_i32_0 : i32, i32
  }
}

module attributes {stable_mosaic.version = 11 : i64} {
  func.func @gru_in_proj_kernel(%arg0: i32, %arg1: memref<16x32xf32, #tpu.memory_space<vmem>>, %arg2: memref<32x96xbf16, #tpu.memory_space<vmem>>, %arg3: memref<1x96xf32, #tpu.memory_space<vmem>>, %arg4: memref<16x96xf32, #tpu.memory_space<vmem>>) attributes {dimension_semantics = [#tpu.dimension_semantics<parallel>], iteration_bounds = array<i64: 1>, scalar_prefetch = 0 : i64, scratch_operands = 0 : i64, tpu.core_type = #tpu.core_type<tc>, window_params = [{transform_indices = @transform_0, window_bounds = array<i64: 16, 32>}, {pipeline_mode = #tpu.pipeline_mode<synchronous>, transform_indices = @transform_1, window_bounds = array<i64: 32, 96>}, {pipeline_mode = #tpu.pipeline_mode<synchronous>, transform_indices = @transform_2, window_bounds = array<i64: 1, 96>}, {transform_indices = @transform_3, window_bounds = array<i64: 16, 96>}]} {
    %c0 = arith.constant 0 : index
    %c0_0 = arith.constant 0 : index
    %0 = vector.load %arg1[%c0, %c0_0] : memref<16x32xf32, #tpu.memory_space<vmem>>, vector<16x32xf32>
    %1 = arith.truncf %0 : vector<16x32xf32> to vector<16x32xbf16>
    %c0_1 = arith.constant 0 : index
    %c0_2 = arith.constant 0 : index
    %2 = vector.load %arg2[%c0_1, %c0_2] : memref<32x96xbf16, #tpu.memory_space<vmem>>, vector<32x96xbf16>
    %cst = arith.constant dense<0.000000e+00> : vector<16x96xf32>
    %3 = tpu.matmul %1, %2, %cst {dimension_numbers = #tpu.dot_dimension_numbers<[1], [0], [0], [1], [0, 0, 1, 1], [], []>} : vector<16x32xbf16>, vector<32x96xbf16>, vector<16x96xf32> -> vector<16x96xf32>
    %c0_3 = arith.constant 0 : index
    %c0_4 = arith.constant 0 : index
    %4 = vector.load %arg3[%c0_3, %c0_4] : memref<1x96xf32, #tpu.memory_space<vmem>>, vector<1x96xf32>
    %5 = vector.broadcast %4 : vector<1x96xf32> to vector<16x96xf32>
    %6 = arith.addf %3, %5 : vector<16x96xf32>
    %c0_5 = arith.constant 0 : index
    %c0_6 = arith.constant 0 : index
    %7 = vector.load %arg4[%c0_5, %c0_6] : memref<16x96xf32, #tpu.memory_space<vmem>>, vector<16x96xf32>
    tpu.vector_store %arg4[%c0_5, %c0_6], %6 {strides = array<i32>} : memref<16x96xf32, #tpu.memory_space<vmem>>, vector<16x96xf32>,
    return
  }
  func.func @transform_0(%arg0: i32) -> (i32, i32) {
    %c0_i32 = arith.constant 0 : i32
    %c0_i32_0 = arith.constant 0 : i32
    return %arg0, %c0_i32 : i32, i32
  }
  func.func @transform_1(%arg0: i32) -> (i32, i32) {
    %c0_i32 = arith.constant 0 : i32
    %c0_i32_0 = arith.constant 0 : i32
    %c0_i32_1 = arith.constant 0 : i32
    return %c0_i32, %c0_i32_0 : i32, i32
  }
  func.func @transform_2(%arg0: i32) -> (i32, i32) {
    %c0_i32 = arith.constant 0 : i32
    %c0_i32_0 = arith.constant 0 : i32
    %c0_i32_1 = arith.constant 0 : i32
    return %c0_i32, %c0_i32_0 : i32, i32
  }
  func.func @transform_3(%arg0: i32) -> (i32, i32) {
    %c0_i32 = arith.constant 0 : i32
    %c0_i32_0 = arith.constant 0 : i32
    return %arg0, %c0_i32 : i32, i32
  }
}

module attributes {stable_mosaic.version = 11 : i64} {
  func.func @head_kernel(%arg0: i32, %arg1: memref<2x8x64xf32, #tpu.memory_space<vmem>>, %arg2: memref<2x32xf32, #tpu.memory_space<vmem>>, %arg3: memref<64x32xbf16, #tpu.memory_space<vmem>>, %arg4: memref<1x32xf32, #tpu.memory_space<vmem>>, %arg5: memref<32x32xbf16, #tpu.memory_space<vmem>>, %arg6: memref<1x32xf32, #tpu.memory_space<vmem>>, %arg7: memref<1x1x32xf32, #tpu.memory_space<vmem>>, %arg8: memref<1x1xf32, #tpu.memory_space<vmem>>, %arg9: memref<32x32xbf16, #tpu.memory_space<vmem>>, %arg10: memref<1x32xf32, #tpu.memory_space<vmem>>, %arg11: memref<64x32xbf16, #tpu.memory_space<vmem>>, %arg12: memref<1x32xf32, #tpu.memory_space<vmem>>, %arg13: memref<64x32xbf16, #tpu.memory_space<vmem>>, %arg14: memref<1x32xf32, #tpu.memory_space<vmem>>, %arg15: memref<32x64xbf16, #tpu.memory_space<vmem>>, %arg16: memref<32x64xbf16, #tpu.memory_space<vmem>>, %arg17: memref<1x64xf32, #tpu.memory_space<vmem>>, %arg18: memref<64x128xbf16, #tpu.memory_space<vmem>>, %arg19: memref<1x128xf32, #tpu.memory_space<vmem>>, %arg20: memref<2x128xf32, #tpu.memory_space<vmem>>) attributes {dimension_semantics = [#tpu.dimension_semantics<parallel>], iteration_bounds = array<i64: 1>, scalar_prefetch = 0 : i64, scratch_operands = 0 : i64, tpu.core_type = #tpu.core_type<tc>, window_params = [{transform_indices = @transform_0, window_bounds = array<i64: 2, 8, 64>}, {transform_indices = @transform_1, window_bounds = array<i64: 2, 32>}, {pipeline_mode = #tpu.pipeline_mode<synchronous>, transform_indices = @transform_2, window_bounds = array<i64: 64, 32>}, {pipeline_mode = #tpu.pipeline_mode<synchronous>, transform_indices = @transform_3, window_bounds = array<i64: 1, 32>}, {pipeline_mode = #tpu.pipeline_mode<synchronous>, transform_indices = @transform_4, window_bounds = array<i64: 32, 32>}, {pipeline_mode = #tpu.pipeline_mode<synchronous>, transform_indices = @transform_5, window_bounds = array<i64: 1, 32>}, {pipeline_mode = #tpu.pipeline_mode<synchronous>, transform_indices = @transform_6, window_bounds = array<i64: 1, 1, 32>}, {pipeline_mode = #tpu.pipeline_mode<synchronous>, transform_indices = @transform_7, window_bounds = array<i64: 1, 1>}, {pipeline_mode = #tpu.pipeline_mode<synchronous>, transform_indices = @transform_8, window_bounds = array<i64: 32, 32>}, {pipeline_mode = #tpu.pipeline_mode<synchronous>, transform_indices = @transform_9, window_bounds = array<i64: 1, 32>}, {pipeline_mode = #tpu.pipeline_mode<synchronous>, transform_indices = @transform_10, window_bounds = array<i64: 64, 32>}, {pipeline_mode = #tpu.pipeline_mode<synchronous>, transform_indices = @transform_11, window_bounds = array<i64: 1, 32>}, {pipeline_mode = #tpu.pipeline_mode<synchronous>, transform_indices = @transform_12, window_bounds = array<i64: 64, 32>}, {pipeline_mode = #tpu.pipeline_mode<synchronous>, transform_indices = @transform_13, window_bounds = array<i64: 1, 32>}, {pipeline_mode = #tpu.pipeline_mode<synchronous>, transform_indices = @transform_14, window_bounds = array<i64: 32, 64>}, {pipeline_mode = #tpu.pipeline_mode<synchronous>, transform_indices = @transform_15, window_bounds = array<i64: 32, 64>}, {pipeline_mode = #tpu.pipeline_mode<synchronous>, transform_indices = @transform_16, window_bounds = array<i64: 1, 64>}, {pipeline_mode = #tpu.pipeline_mode<synchronous>, transform_indices = @transform_17, window_bounds = array<i64: 64, 128>}, {pipeline_mode = #tpu.pipeline_mode<synchronous>, transform_indices = @transform_18, window_bounds = array<i64: 1, 128>}, {transform_indices = @transform_19, window_bounds = array<i64: 2, 128>}]} {
    %c0 = arith.constant 0 : index
    %c0_0 = arith.constant 0 : index
    %c0_1 = arith.constant 0 : index
    %0 = vector.load %arg1[%c0, %c0_0, %c0_1] : memref<2x8x64xf32, #tpu.memory_space<vmem>>, vector<2x8x64xf32>
    %c0_2 = arith.constant 0 : index
    %c0_3 = arith.constant 0 : index
    %1 = vector.load %arg2[%c0_2, %c0_3] : memref<2x32xf32, #tpu.memory_space<vmem>>, vector<2x32xf32>
    %2 = arith.truncf %1 : vector<2x32xf32> to vector<2x32xbf16>
    %3 = vector.shape_cast %0 : vector<2x8x64xf32> to vector<16x64xf32>
    %4 = arith.truncf %3 : vector<16x64xf32> to vector<16x64xbf16>
    %c0_4 = arith.constant 0 : index
    %c0_5 = arith.constant 0 : index
    %5 = vector.load %arg3[%c0_4, %c0_5] : memref<64x32xbf16, #tpu.memory_space<vmem>>, vector<64x32xbf16>
    %cst = arith.constant dense<0.000000e+00> : vector<16x32xf32>
    %6 = tpu.matmul %4, %5, %cst {dimension_numbers = #tpu.dot_dimension_numbers<[1], [0], [0], [1], [0, 0, 1, 1], [], []>} : vector<16x64xbf16>, vector<64x32xbf16>, vector<16x32xf32> -> vector<16x32xf32>
    %c0_6 = arith.constant 0 : index
    %c0_7 = arith.constant 0 : index
    %7 = vector.load %arg4[%c0_6, %c0_7] : memref<1x32xf32, #tpu.memory_space<vmem>>, vector<1x32xf32>
    %8 = vector.broadcast %7 : vector<1x32xf32> to vector<16x32xf32>
    %9 = arith.addf %6, %8 : vector<16x32xf32>
    %cst_8 = arith.constant 0.000000e+00 : f32
    %10 = vector.broadcast %cst_8 : f32 to vector<16x32xf32>
    %11 = arith.maximumf %9, %10 : vector<16x32xf32>
    %12 = vector.shape_cast %11 : vector<16x32xf32> to vector<2x8x32xf32>
    %c0_9 = arith.constant 0 : index
    %c0_10 = arith.constant 0 : index
    %13 = vector.load %arg5[%c0_9, %c0_10] : memref<32x32xbf16, #tpu.memory_space<vmem>>, vector<32x32xbf16>
    %cst_11 = arith.constant dense<0.000000e+00> : vector<2x32xf32>
    %14 = tpu.matmul %2, %13, %cst_11 {dimension_numbers = #tpu.dot_dimension_numbers<[1], [0], [0], [1], [0, 0, 1, 1], [], []>} : vector<2x32xbf16>, vector<32x32xbf16>, vector<2x32xf32> -> vector<2x32xf32>
    %c0_12 = arith.constant 0 : index
    %c0_13 = arith.constant 0 : index
    %15 = vector.load %arg6[%c0_12, %c0_13] : memref<1x32xf32, #tpu.memory_space<vmem>>, vector<1x32xf32>
    %16 = vector.broadcast %15 : vector<1x32xf32> to vector<2x32xf32>
    %17 = arith.addf %14, %16 : vector<2x32xf32>
    %cst_14 = arith.constant 0.000000e+00 : f32
    %18 = vector.broadcast %cst_14 : f32 to vector<2x32xf32>
    %19 = arith.maximumf %17, %18 : vector<2x32xf32>
    %20 = vector.shape_cast %19 : vector<2x32xf32> to vector<2x1x32xf32>
    %21 = vector.broadcast %20 : vector<2x1x32xf32> to vector<2x8x32xf32>
    %22 = arith.mulf %12, %21 : vector<2x8x32xf32>
    %c0_15 = arith.constant 0 : index
    %c0_16 = arith.constant 0 : index
    %c0_17 = arith.constant 0 : index
    %23 = vector.load %arg7[%c0_15, %c0_16, %c0_17] : memref<1x1x32xf32, #tpu.memory_space<vmem>>, vector<1x1x32xf32>
    %24 = vector.broadcast %23 : vector<1x1x32xf32> to vector<2x8x32xf32>
    %25 = arith.mulf %22, %24 : vector<2x8x32xf32>
    %cst_18 = arith.constant dense<0.000000e+00> : vector<2x8xf32>
    %26 = vector.multi_reduction <add>, %25, %cst_18 [2] : vector<2x8x32xf32> to vector<2x8xf32>
    %c0_19 = arith.constant 0 : index
    %c0_20 = arith.constant 0 : index
    %27 = vector.load %arg8[%c0_19, %c0_20] : memref<1x1xf32, #tpu.memory_space<vmem>>, vector<1x1xf32>
    %28 = vector.broadcast %27 : vector<1x1xf32> to vector<2x8xf32>
    %29 = arith.addf %26, %28 : vector<2x8xf32>
    %cst_21 = arith.constant dense<0xFF800000> : vector<2xf32>
    %30 = vector.multi_reduction <maximumf>, %29, %cst_21 [1] : vector<2x8xf32> to vector<2xf32>
    %31 = vector.shape_cast %30 : vector<2xf32> to vector<2x1xf32>
    %32 = vector.broadcast %31 : vector<2x1xf32> to vector<2x8xf32>
    %33 = arith.subf %29, %32 : vector<2x8xf32>
    %34 = math.exp %33 : vector<2x8xf32>
    %cst_22 = arith.constant dense<0.000000e+00> : vector<2xf32>
    %35 = vector.multi_reduction <add>, %34, %cst_22 [1] : vector<2x8xf32> to vector<2xf32>
    %36 = vector.shape_cast %35 : vector<2xf32> to vector<2x1xf32>
    %37 = tpu.reciprocal %36 : vector<2x1xf32> -> vector<2x1xf32>
    %38 = vector.broadcast %37 : vector<2x1xf32> to vector<2x8xf32>
    %39 = arith.mulf %34, %38 : vector<2x8xf32>
    %40 = vector.shape_cast %39 : vector<2x8xf32> to vector<2x8x1xf32>
    %41 = vector.broadcast %40 : vector<2x8x1xf32> to vector<2x8x64xf32>
    %42 = arith.mulf %41, %0 : vector<2x8x64xf32>
    %cst_23 = arith.constant dense<0.000000e+00> : vector<2x64xf32>
    %43 = vector.multi_reduction <add>, %42, %cst_23 [1] : vector<2x8x64xf32> to vector<2x64xf32>
    %cst_24 = arith.constant dense<0.000000e+00> : vector<2x64xf32>
    %44 = vector.multi_reduction <add>, %0, %cst_24 [1] : vector<2x8x64xf32> to vector<2x64xf32>
    %cst_25 = arith.constant 1.250000e-01 : f32
    %45 = vector.broadcast %cst_25 : f32 to vector<2x64xf32>
    %46 = arith.mulf %44, %45 : vector<2x64xf32>
    %c0_26 = arith.constant 0 : index
    %c0_27 = arith.constant 0 : index
    %47 = vector.load %arg9[%c0_26, %c0_27] : memref<32x32xbf16, #tpu.memory_space<vmem>>, vector<32x32xbf16>
    %cst_28 = arith.constant dense<0.000000e+00> : vector<2x32xf32>
    %48 = tpu.matmul %2, %47, %cst_28 {dimension_numbers = #tpu.dot_dimension_numbers<[1], [0], [0], [1], [0, 0, 1, 1], [], []>} : vector<2x32xbf16>, vector<32x32xbf16>, vector<2x32xf32> -> vector<2x32xf32>
    %c0_29 = arith.constant 0 : index
    %c0_30 = arith.constant 0 : index
    %49 = vector.load %arg10[%c0_29, %c0_30] : memref<1x32xf32, #tpu.memory_space<vmem>>, vector<1x32xf32>
    %50 = vector.broadcast %49 : vector<1x32xf32> to vector<2x32xf32>
    %51 = arith.addf %48, %50 : vector<2x32xf32>
    %cst_31 = arith.constant 0.000000e+00 : f32
    %52 = vector.broadcast %cst_31 : f32 to vector<2x32xf32>
    %53 = arith.maximumf %51, %52 : vector<2x32xf32>
    %54 = arith.truncf %43 : vector<2x64xf32> to vector<2x64xbf16>
    %c0_32 = arith.constant 0 : index
    %c0_33 = arith.constant 0 : index
    %55 = vector.load %arg11[%c0_32, %c0_33] : memref<64x32xbf16, #tpu.memory_space<vmem>>, vector<64x32xbf16>
    %cst_34 = arith.constant dense<0.000000e+00> : vector<2x32xf32>
    %56 = tpu.matmul %54, %55, %cst_34 {dimension_numbers = #tpu.dot_dimension_numbers<[1], [0], [0], [1], [0, 0, 1, 1], [], []>} : vector<2x64xbf16>, vector<64x32xbf16>, vector<2x32xf32> -> vector<2x32xf32>
    %c0_35 = arith.constant 0 : index
    %c0_36 = arith.constant 0 : index
    %57 = vector.load %arg12[%c0_35, %c0_36] : memref<1x32xf32, #tpu.memory_space<vmem>>, vector<1x32xf32>
    %58 = vector.broadcast %57 : vector<1x32xf32> to vector<2x32xf32>
    %59 = arith.addf %56, %58 : vector<2x32xf32>
    %cst_37 = arith.constant 0.000000e+00 : f32
    %60 = vector.broadcast %cst_37 : f32 to vector<2x32xf32>
    %61 = arith.maximumf %59, %60 : vector<2x32xf32>
    %62 = arith.truncf %46 : vector<2x64xf32> to vector<2x64xbf16>
    %c0_38 = arith.constant 0 : index
    %c0_39 = arith.constant 0 : index
    %63 = vector.load %arg13[%c0_38, %c0_39] : memref<64x32xbf16, #tpu.memory_space<vmem>>, vector<64x32xbf16>
    %cst_40 = arith.constant dense<0.000000e+00> : vector<2x32xf32>
    %64 = tpu.matmul %62, %63, %cst_40 {dimension_numbers = #tpu.dot_dimension_numbers<[1], [0], [0], [1], [0, 0, 1, 1], [], []>} : vector<2x64xbf16>, vector<64x32xbf16>, vector<2x32xf32> -> vector<2x32xf32>
    %c0_41 = arith.constant 0 : index
    %c0_42 = arith.constant 0 : index
    %65 = vector.load %arg14[%c0_41, %c0_42] : memref<1x32xf32, #tpu.memory_space<vmem>>, vector<1x32xf32>
    %66 = vector.broadcast %65 : vector<1x32xf32> to vector<2x32xf32>
    %67 = arith.addf %64, %66 : vector<2x32xf32>
    %cst_43 = arith.constant 0.000000e+00 : f32
    %68 = vector.broadcast %cst_43 : f32 to vector<2x32xf32>
    %69 = arith.maximumf %67, %68 : vector<2x32xf32>
    %70 = arith.mulf %53, %61 : vector<2x32xf32>
    %71 = arith.mulf %53, %69 : vector<2x32xf32>
    %72 = arith.truncf %70 : vector<2x32xf32> to vector<2x32xbf16>
    %c0_44 = arith.constant 0 : index
    %c0_45 = arith.constant 0 : index
    %73 = vector.load %arg15[%c0_44, %c0_45] : memref<32x64xbf16, #tpu.memory_space<vmem>>, vector<32x64xbf16>
    %cst_46 = arith.constant dense<0.000000e+00> : vector<2x64xf32>
    %74 = tpu.matmul %72, %73, %cst_46 {dimension_numbers = #tpu.dot_dimension_numbers<[1], [0], [0], [1], [0, 0, 1, 1], [], []>} : vector<2x32xbf16>, vector<32x64xbf16>, vector<2x64xf32> -> vector<2x64xf32>
    %75 = arith.truncf %71 : vector<2x32xf32> to vector<2x32xbf16>
    %c0_47 = arith.constant 0 : index
    %c0_48 = arith.constant 0 : index
    %76 = vector.load %arg16[%c0_47, %c0_48] : memref<32x64xbf16, #tpu.memory_space<vmem>>, vector<32x64xbf16>
    %cst_49 = arith.constant dense<0.000000e+00> : vector<2x64xf32>
    %77 = tpu.matmul %75, %76, %cst_49 {dimension_numbers = #tpu.dot_dimension_numbers<[1], [0], [0], [1], [0, 0, 1, 1], [], []>} : vector<2x32xbf16>, vector<32x64xbf16>, vector<2x64xf32> -> vector<2x64xf32>
    %78 = arith.addf %74, %77 : vector<2x64xf32>
    %c0_50 = arith.constant 0 : index
    %c0_51 = arith.constant 0 : index
    %79 = vector.load %arg17[%c0_50, %c0_51] : memref<1x64xf32, #tpu.memory_space<vmem>>, vector<1x64xf32>
    %80 = vector.broadcast %79 : vector<1x64xf32> to vector<2x64xf32>
    %81 = arith.addf %78, %80 : vector<2x64xf32>
    %cst_52 = arith.constant 0.000000e+00 : f32
    %82 = vector.broadcast %cst_52 : f32 to vector<2x64xf32>
    %83 = arith.maximumf %81, %82 : vector<2x64xf32>
    %84 = arith.truncf %83 : vector<2x64xf32> to vector<2x64xbf16>
    %c0_53 = arith.constant 0 : index
    %c0_54 = arith.constant 0 : index
    %85 = vector.load %arg18[%c0_53, %c0_54] : memref<64x128xbf16, #tpu.memory_space<vmem>>, vector<64x128xbf16>
    %cst_55 = arith.constant dense<0.000000e+00> : vector<2x128xf32>
    %86 = tpu.matmul %84, %85, %cst_55 {dimension_numbers = #tpu.dot_dimension_numbers<[1], [0], [0], [1], [0, 0, 1, 1], [], []>} : vector<2x64xbf16>, vector<64x128xbf16>, vector<2x128xf32> -> vector<2x128xf32>
    %c0_56 = arith.constant 0 : index
    %c0_57 = arith.constant 0 : index
    %87 = vector.load %arg19[%c0_56, %c0_57] : memref<1x128xf32, #tpu.memory_space<vmem>>, vector<1x128xf32>
    %88 = vector.broadcast %87 : vector<1x128xf32> to vector<2x128xf32>
    %89 = arith.addf %86, %88 : vector<2x128xf32>
    %c0_58 = arith.constant 0 : index
    %c0_59 = arith.constant 0 : index
    %90 = vector.load %arg20[%c0_58, %c0_59] : memref<2x128xf32, #tpu.memory_space<vmem>>, vector<2x128xf32>
    tpu.vector_store %arg20[%c0_58, %c0_59], %89 {strides = array<i32>} : memref<2x128xf32, #tpu.memory_space<vmem>>, vector<2x128xf32>,
    return
  }
  func.func @transform_0(%arg0: i32) -> (i32, i32, i32) {
    %c0_i32 = arith.constant 0 : i32
    %c0_i32_0 = arith.constant 0 : i32
    %c0_i32_1 = arith.constant 0 : i32
    return %arg0, %c0_i32, %c0_i32_0 : i32, i32, i32
  }
  func.func @transform_1(%arg0: i32) -> (i32, i32) {
    %c0_i32 = arith.constant 0 : i32
    %c0_i32_0 = arith.constant 0 : i32
    return %arg0, %c0_i32 : i32, i32
  }
  func.func @transform_2(%arg0: i32) -> (i32, i32) {
    %c0_i32 = arith.constant 0 : i32
    %c0_i32_0 = arith.constant 0 : i32
    %c0_i32_1 = arith.constant 0 : i32
    return %c0_i32, %c0_i32_0 : i32, i32
  }
  func.func @transform_3(%arg0: i32) -> (i32, i32) {
    %c0_i32 = arith.constant 0 : i32
    %c0_i32_0 = arith.constant 0 : i32
    %c0_i32_1 = arith.constant 0 : i32
    return %c0_i32, %c0_i32_0 : i32, i32
  }
  func.func @transform_4(%arg0: i32) -> (i32, i32) {
    %c0_i32 = arith.constant 0 : i32
    %c0_i32_0 = arith.constant 0 : i32
    %c0_i32_1 = arith.constant 0 : i32
    return %c0_i32, %c0_i32_0 : i32, i32
  }
  func.func @transform_5(%arg0: i32) -> (i32, i32) {
    %c0_i32 = arith.constant 0 : i32
    %c0_i32_0 = arith.constant 0 : i32
    %c0_i32_1 = arith.constant 0 : i32
    return %c0_i32, %c0_i32_0 : i32, i32
  }
  func.func @transform_6(%arg0: i32) -> (i32, i32, i32) {
    %c0_i32 = arith.constant 0 : i32
    %c0_i32_0 = arith.constant 0 : i32
    %c0_i32_1 = arith.constant 0 : i32
    %c0_i32_2 = arith.constant 0 : i32
    return %c0_i32, %c0_i32_0, %c0_i32_1 : i32, i32, i32
  }
  func.func @transform_7(%arg0: i32) -> (i32, i32) {
    %c0_i32 = arith.constant 0 : i32
    %c0_i32_0 = arith.constant 0 : i32
    %c0_i32_1 = arith.constant 0 : i32
    return %c0_i32, %c0_i32_0 : i32, i32
  }
  func.func @transform_8(%arg0: i32) -> (i32, i32) {
    %c0_i32 = arith.constant 0 : i32
    %c0_i32_0 = arith.constant 0 : i32
    %c0_i32_1 = arith.constant 0 : i32
    return %c0_i32, %c0_i32_0 : i32, i32
  }
  func.func @transform_9(%arg0: i32) -> (i32, i32) {
    %c0_i32 = arith.constant 0 : i32
    %c0_i32_0 = arith.constant 0 : i32
    %c0_i32_1 = arith.constant 0 : i32
    return %c0_i32, %c0_i32_0 : i32, i32
  }
  func.func @transform_10(%arg0: i32) -> (i32, i32) {
    %c0_i32 = arith.constant 0 : i32
    %c0_i32_0 = arith.constant 0 : i32
    %c0_i32_1 = arith.constant 0 : i32
    return %c0_i32, %c0_i32_0 : i32, i32
  }
  func.func @transform_11(%arg0: i32) -> (i32, i32) {
    %c0_i32 = arith.constant 0 : i32
    %c0_i32_0 = arith.constant 0 : i32
    %c0_i32_1 = arith.constant 0 : i32
    return %c0_i32, %c0_i32_0 : i32, i32
  }
  func.func @transform_12(%arg0: i32) -> (i32, i32) {
    %c0_i32 = arith.constant 0 : i32
    %c0_i32_0 = arith.constant 0 : i32
    %c0_i32_1 = arith.constant 0 : i32
    return %c0_i32, %c0_i32_0 : i32, i32
  }
  func.func @transform_13(%arg0: i32) -> (i32, i32) {
    %c0_i32 = arith.constant 0 : i32
    %c0_i32_0 = arith.constant 0 : i32
    %c0_i32_1 = arith.constant 0 : i32
    return %c0_i32, %c0_i32_0 : i32, i32
  }
  func.func @transform_14(%arg0: i32) -> (i32, i32) {
    %c0_i32 = arith.constant 0 : i32
    %c0_i32_0 = arith.constant 0 : i32
    %c0_i32_1 = arith.constant 0 : i32
    return %c0_i32, %c0_i32_0 : i32, i32
  }
  func.func @transform_15(%arg0: i32) -> (i32, i32) {
    %c0_i32 = arith.constant 0 : i32
    %c0_i32_0 = arith.constant 0 : i32
    %c0_i32_1 = arith.constant 0 : i32
    return %c0_i32, %c0_i32_0 : i32, i32
  }
  func.func @transform_16(%arg0: i32) -> (i32, i32) {
    %c0_i32 = arith.constant 0 : i32
    %c0_i32_0 = arith.constant 0 : i32
    %c0_i32_1 = arith.constant 0 : i32
    return %c0_i32, %c0_i32_0 : i32, i32
  }
  func.func @transform_17(%arg0: i32) -> (i32, i32) {
    %c0_i32 = arith.constant 0 : i32
    %c0_i32_0 = arith.constant 0 : i32
    %c0_i32_1 = arith.constant 0 : i32
    return %c0_i32, %c0_i32_0 : i32, i32
  }
  func.func @transform_18(%arg0: i32) -> (i32, i32) {
    %c0_i32 = arith.constant 0 : i32
    %c0_i32_0 = arith.constant 0 : i32
    %c0_i32_1 = arith.constant 0 : i32
    return %c0_i32, %c0_i32_0 : i32, i32
  }
  func.func @transform_19(%arg0: i32) -> (i32, i32) {
    %c0_i32 = arith.constant 0 : i32
    %c0_i32_0 = arith.constant 0 : i32
    return %arg0, %c0_i32 : i32, i32
  }
}

</mosaic_0001>

<bundles_post_ra>
// kernel: _lambda_.4
= control target key start
LH: loop header
LB: loop body
LE: loop exit
PB: predicated region body
PF: predicated region fallthrough
CT: control target
= control target key end

     0   :  { %s380_s12 = smov 0   ;;  %s412_s0 = inlined_call_operand.vmem [shape: f32[8,2,96], index: 0, kind: input, shape index: {}]   ;;  %s413_s1 = inlined_call_operand.vmem [shape: bf16[32,96], index: 1, kind: input, shape index: {}]   ;;  %s414_s2 = inlined_call_operand.vmem [shape: f32[1,96], index: 2, kind: input, shape index: {}]   ;;  %s415_s3 = inlined_call_operand.vmem [shape: f32[2,32], index: 3, kind: output, shape index: {}]  }
   0x1 LB: > { %s386_s13 = sadd.s32 4294967295, %s352_s12   ;;  %p302_p0 = scmp.ge.s32.totalorder %s352_s12, 1  ;;  %s352_s12 = sphi %s380_s12, %s13_s12  }
   0x2   : > { %p131_p1 = scmp.lt.s32.totalorder %s352_s12, 9 }
   0x4   : > { %p132_p2 = pnand %p302_p0, %p131_p1 }
   0x5   : > { %p149_p3 = scmp.lt.s32.totalorder (!%p132_p2), %s386_s13, 7  ;;  %p304_p4 = scmp.ne.s32.totalorder (!%p132_p2), %s386_s13, 0 }
   0x6   : > { %135 = sbr.rel (%p132_p2) target bundleno = 728 (0x2d8), region = 32 }
   0xd   : > { %s150_s14 = scalar_select %p149_p3, %s386_s13, 7 }
   0xe   : > { %157 = sbr.rel (%p304_p4) target bundleno = 21 (0x15), region = 36  ;;  %vm158_vm0 = vcmask (!%p304_p4), 254976   ;;  %v354_v0 = vmov (!%p304_p4), 0.0  }
   0xf   : > { %s303_s15 = sshll.u32 %s150_s14, 1  ;;  %159 = vst.msk [vmem:[#allocation2] sm:$0x3] (!%p304_p4), %vm158_vm0, %v354_v0 }
  0x10   : > { %s152_s18 = scalar_lea.vmem %s412_s0, %s303_s15 }
  0x15 PF: > { %v338_v1 = vld [vmem:[%s413_s1] sm:$0xff]   ;;  %v355_v2 = vmov 0.0   ;;  %v339_v3 = vld [vmem:[%s413_s1 + $0x8] sm:$0xff]   ;;  %vm356_vm1 = vmmov 0   ;;  %vm186_vm2 = vcmask 261120   ;;  %s357_s25 = smov 64  }
  0x16   : > { %316 = vmatprep.subr.bf16.mxu0 %v355_v2  ;;  %320 = vmatprep.mubr.msk.bf16.mxu0 %vm356_vm1, %v355_v2  ;;  %v160_v4 = vld [vmem:[#allocation2] sm:$0x3]  ;;  %s358_s26 = smov 96   ;;  %s359_s27 = smov 32   ;;  %vm264_vm3 = vcmask 254976  }
  0x17   : > { %317 = vmatpush3.bf16.msra.mxu0 %v338_v1  ;;  %v162_v5 = vpack.c.bf16 %v160_v4, %v160_v4  ;;  %v305_v6 = vld [vmem:[%s414_s2] ss:$0 sm:$0xff]  ;;  %p310_p5 = scmp.ne.s32.totalorder %s386_s13, 7 }
  0x18   : > { %318 = vmatprep.subr.bf16.mxu0 %v355_v2  ;;  %v161_v12 = vld [vmem:[%s152_s18] sm:$0x3] }
  0x1b   : > { %319 = vmatpush3.bf16.msra.mxu0 %v339_v3 }
  0x1e   : > { %321 = vmatmul.mubr.msk.bf16.vlgmr.msra.gmra.mrb[0].mxu0 %vm186_vm2, %v162_v5 }
  0xf1   : > { %v224_v7 = vpop.f32.mrb[0].mxu0 }
  0xf2   : > { %v225_v8 = vadd.f32 %v305_v6, %v224_v7  ;;  %v322_v9 = vpop.f32.mrb[1].mxu0 }
  0xf3   : > { %v227_v10 = vpop.f32.mrb[2].mxu0 }
  0xf4   : > { %238 = vrot.lane.b32.xlu0 %v225_v8, %s357_s25  ;;  %v323_v11 = vpop.f32.mrb[3].mxu0  ;;  %v230_v13 = vadd.f32 %v225_v8, %v161_v12 }
  0xf6   : > { %v309_v14 = vmul.f32 -1.442695, %v230_v13 }
  0xf8   : > { %340 = vpow2.f32 %v309_v14 }
 0x102   : > { %v341_v15 = vpop.eup %340 }
 0x103   : > { %v234_v16 = vadd.f32 1.0, %v341_v15 }
 0x105   : > { %342 = vrcp.f32 %v234_v16 }
 0x10f   : > { %v343_v17 = vpop.eup %342 }
 0x110   : > { %v248_v24 = vsub.f32 1.0, %v343_v17 }
 0x166   : > { %v239_v18 = vpop.permute.xlu0 %238 }
 0x167   : > { %v241_v19 = vmul.f32 %v343_v17, %v239_v18 }
 0x169   : > { %243 = vrot.lane.b32.xlu0 %v241_v19, %s357_s25 }
 0x1db   : > { %v244_v20 = vpop.permute.xlu0 %243 }
 0x1dc   : > { %v246_v21 = vadd.f32 %v244_v20, %v161_v12 }
 0x1de   : > { %344 = vtanh.f32 %v246_v21 }
 0x1e8   : > { %v345_v22 = vpop.eup %344 }
 0x1e9   : > { %250 = vrot.lane.b32.xlu1 %v345_v22, %s358_s26 }
 0x1ed   : > { %255 = vrot.lane.b32.xlu1 %v160_v4, %s359_s27 }
 0x25b   : > { %v251_v23 = vpop.permute.xlu1 %250 }
 0x25c   : > { %v253_v26 = vmul.f32 %v251_v23, %v248_v24 }
 0x25f   : > { %v256_v25 = vpop.permute.xlu1 %255 }
 0x260   : > { %v258_v27 = vmul.f32 %v343_v17, %v256_v25 }
 0x262   : > { %v259_v28 = vadd.f32 %v258_v27, %v253_v26 }
 0x264   : > { %261 = vrot.lane.b32.xlu0 %v259_v28, %s358_s26 }
 0x2d1   : > { %269 = sbr.rel (%p310_p5) target bundleno = 728 (0x2d8), region = 40 }
 0x2d6   : > { %v262_v29 = vpop.permute.xlu0 %261 }
 0x2d7   : > { %265 = vst.msk [vmem:[#allocation2] sm:$0x3] %vm264_vm3, %v262_v29  ;;  %270 = vst.msk [vmem:[%s415_s3] sm:$0x3] (!%p310_p5), %vm264_vm3, %v262_v29 }
 0x2d8 PF: > { %s13_s12 = sadd.s32 1, %s352_s12  }
 0x2d9   : > { %p10_p6 = scmp.ge.s32.totalorder %s13_s12, 10  }
 0x2db   :  { %12 = sbr.rel (!%p10_p6) target bundleno = 1 (0x1), region = 66 }

// kernel: _lambda_.3
= control target key start
LH: loop header
LB: loop body
LE: loop exit
PB: predicated region body
PF: predicated region fallthrough
CT: control target
= control target key end

     0   :  { %v112_v0 = vmov 0.0   ;;  %vm113_vm0 = vmmov 0   ;;  %vm41_vm1 = vcmask 261120   ;;  %vm86_vm2 = vcmask 785408   ;;  %s155_s1 = inlined_call_operand.vmem [shape: bf16[32,96], index: 1, kind: input, shape index: {}]   ;;  %s156_s0 = inlined_call_operand.vmem [shape: f32[16,32], index: 0, kind: input, shape index: {}]   ;;  %s157_s2 = inlined_call_operand.vmem [shape: f32[1,96], index: 2, kind: input, shape index: {}]   ;;  %s158_s3 = inlined_call_operand.vmem [shape: f32[16,96], index: 3, kind: output, shape index: {}]  }
   0x1   :  { %100 = vmatprep.subr.bf16.mxu0 %v112_v0  ;;  %v110_v1 = vld [vmem:[%s155_s1] sm:$0xff]   ;;  %104 = vmatprep.mubr.msk.bf16.mxu0 %vm113_vm0, %v112_v0  ;;  %v111_v2 = vld [vmem:[%s155_s1 + $0x8] sm:$0xff]  }
   0x2   :  { %101 = vmatpush3.bf16.msra.mxu0 %v110_v1  ;;  %v15_v3 = vld [vmem:[%s156_s0] sm:$0xff]  ;;  %v16_v4 = vld [vmem:[%s156_s0 + $0x8] sm:$0xff] }
   0x3   :  { %102 = vmatprep.subr.bf16.mxu0 %v112_v0  ;;  %v17_v5 = vpack.c.bf16 %v16_v4, %v15_v3  ;;  %v93_v6 = vld [vmem:[%s157_s2] ss:$0 sm:$0xff] }
   0x6   :  { %103 = vmatpush3.bf16.msra.mxu0 %v111_v2 }
   0x9   :  { %105 = vmatmul.mubr.msk.bf16.vlgmr.msra.gmra.mrb[0].mxu0 %vm41_vm1, %v17_v5 }
  0xdc   :  { %v79_v7 = vpop.f32.mrb[0].mxu0 }
  0xdd   :  { %v80_v8 = vadd.f32 %v93_v6, %v79_v7  ;;  %v106_v9 = vpop.f32.mrb[1].mxu0 }
  0xde   :  { %v82_v10 = vpop.f32.mrb[2].mxu0 }
  0xdf   :  { %87 = vst.msk [vmem:[%s158_s3] sm:$0xff] %vm86_vm2, %v80_v8  ;;  %v83_v11 = vadd.f32 %v93_v6, %v82_v10  ;;  %v107_v12 = vpop.f32.mrb[3].mxu0 }
  0xe1   :  { %88 = vst.msk [vmem:[%s158_s3 + $0x8] sm:$0xff] %vm86_vm2, %v83_v11 }

// kernel: _lambda_.5
= control target key start
LH: loop header
LB: loop body
LE: loop exit
PB: predicated region body
PF: predicated region fallthrough
CT: control target
= control target key end

     0   :  { %s1404_s0 = inlined_call_operand.vmem [shape: f32[2,8,64], index: 0, kind: input, shape index: {}]   ;;  %s1405_s1 = inlined_call_operand.vmem [shape: f32[2,32], index: 1, kind: input, shape index: {}]   ;;  %s1406_s2 = inlined_call_operand.vmem [shape: bf16[64,32], index: 2, kind: input, shape index: {}]   ;;  %s1407_s3 = inlined_call_operand.vmem [shape: f32[1,32], index: 3, kind: input, shape index: {}]   ;;  %s1408_s4 = inlined_call_operand.vmem [shape: bf16[32,32], index: 4, kind: input, shape index: {}]   ;;  %s1409_s5 = inlined_call_operand.vmem [shape: f32[1,32], index: 5, kind: input, shape index: {}]   ;;  %s1410_s6 = inlined_call_operand.vmem [shape: f32[1,1,32], index: 6, kind: input, shape index: {}]   ;;  %s1411_s7 = inlined_call_operand.<no memory space> [shape: f32[1,1], index: 7, kind: input, shape index: {}]   ;;  %s1412_s8 = inlined_call_operand.vmem [shape: bf16[32,32], index: 8, kind: input, shape index: {}]   ;;  %s1413_s9 = inlined_call_operand.vmem [shape: f32[1,32], index: 9, kind: input, shape index: {}]   ;;  %s1414_s10 = inlined_call_operand.vmem [shape: bf16[64,32], index: 10, kind: input, shape index: {}]   ;;  %s1415_s11 = inlined_call_operand.vmem [shape: f32[1,32], index: 11, kind: input, shape index: {}]   ;;  %s1416_s12 = inlined_call_operand.vmem [shape: bf16[64,32], index: 12, kind: input, shape index: {}]   ;;  %s1417_s13 = inlined_call_operand.vmem [shape: f32[1,32], index: 13, kind: input, shape index: {}]   ;;  %s1418_s14 = inlined_call_operand.vmem [shape: bf16[32,64], index: 14, kind: input, shape index: {}]   ;;  %s1419_s15 = inlined_call_operand.vmem [shape: bf16[32,64], index: 15, kind: input, shape index: {}]   ;;  %s1420_s16 = inlined_call_operand.vmem [shape: f32[1,64], index: 16, kind: input, shape index: {}]   ;;  %s1421_s17 = inlined_call_operand.vmem [shape: bf16[64,128], index: 17, kind: input, shape index: {}]   ;;  %s1422_s18 = inlined_call_operand.vmem [shape: f32[1,128], index: 18, kind: input, shape index: {}]   ;;  %s1423_s19 = inlined_call_operand.hbm [shape: f32[2,128], index: 19, kind: output, shape index: {}]  }
   0x1   :  { %1426 = sst [smem:[#allocation6_spill]] %s1404_s0  ;;  %v24_v0 = vstv %s1411_s7 }
   0x2   :  { %1427 = sst [smem:[#allocation7_spill]] %s1405_s1  ;;  %25 = vst [vmem:[#allocation2] sm:$0x1] %v24_v0 }
   0x3   :  { %1428 = sst [smem:[#allocation8_spill]] %s1406_s2 }
   0x4   :  { %1429 = sst [smem:[#allocation9_spill]] %s1407_s3 }
   0x5   :  { %s1430_s1 = sld [smem:[#allocation8_spill]]  ;;  %v1089_v2 = vmov 0.0   ;;  %v1036_v3 = vld [vmem:[%s1408_s4] sm:$0xff]   ;;  %vm1090_vm0 = vmmov 0   ;;  %v1038_v5 = vld [vmem:[%s1408_s4 + $0x8] sm:$0xff]   ;;  %s1431_s27 = sld [smem:[#allocation7_spill]] }
   0x6   :  { %948 = vmatprep.subr.bf16.mxu0 %v1089_v2  ;;  %960 = vmatprep.subr.bf16.mxu1 %v1089_v2  ;;  %vm180_vm1 = vcmask 261120   ;;  %s1432_s21 = sld [smem:[#allocation6_spill]]  ;;  %vm110_vm2 = vcmask 523264  }
   0x7   :  { %964 = vmatprep.mubr.msk.bf16.mxu1 %vm1090_vm0, %v1089_v2  ;;  %961 = vmatpush3.bf16.msra.mxu1 %v1036_v3 }
   0x8   :  { %962 = vmatprep.subr.bf16.mxu1 %v1089_v2  ;;  %956 = vmatprep.mubr.msk.bf16.mxu0 %vm1090_vm0, %v1089_v2 }
   0xb   :  { %v1035_v1 = vld [vmem:[%s1430_s1] sm:$0xff]   ;;  %v1037_v4 = vld [vmem:[%s1430_s1 + $0x8] sm:$0xff]   ;;  %v1039_v8 = vld [vmem:[%s1430_s1 + $0x10] sm:$0xff]   ;;  %963 = vmatpush3.bf16.msra.mxu1 %v1038_v5 }
   0xc   :  { %949 = vmatpush3.bf16.msra.mxu0 %v1035_v1  ;;  %v68_v6 = vld [vmem:[%s1431_s27] sm:$0x3]  ;;  %v1040_v9 = vld [vmem:[%s1430_s1 + $0x18] sm:$0xff]   ;;  %v1237_v11 = vld [vmem:[%s1432_s21 + $0x8] sm:$0xff]  ;;  %968 = vmatprep.subr.bf16.mxu1 %v1089_v2 }
   0xd   :  { %950 = vmatprep.subr.bf16.mxu0 %v1089_v2  ;;  %v1220_v7 = vpack.c.bf16 %v68_v6, %v68_v6  ;;  %v1232_v10 = vld [vmem:[%s1432_s21] sm:$0xff] }
   0xe   :  { %v70_v12 = vpack.c.bf16 %v1237_v11, %v1232_v10 }
   0xf   :  { %965 = vmatmul.mubr.msk.bf16.vlgmr.msra.gmra.mrb[0].mxu1 %vm180_vm1, %v1220_v7 }
  0x10   :  { %951 = vmatpush3.bf16.msra.mxu0 %v1037_v4  ;;  %972 = vmatprep.mubr.msk.bf16.mxu1 %vm1090_vm0, %v1089_v2 }
  0x11   :  { %952 = vmatprep.subr.bf16.mxu0 %v1089_v2 }
  0x14   :  { %953 = vmatpush3.bf16.msra.mxu0 %v1039_v8 }
  0x15   :  { %954 = vmatprep.subr.bf16.mxu0 %v1089_v2 }
  0x18   :  { %955 = vmatpush3.bf16.msra.mxu0 %v1040_v9 }
  0x19   :  { %976 = vmatprep.subr.bf16.mxu0 %v1089_v2 }
  0x1b   :  { %957 = vmatmul.mubr.msk.bf16.vlgmr.msra.gmra.mrb[0].mxu0 %vm110_vm2, %v70_v12 }
  0x1c   :  { %984 = vmatprep.mubr.msk.bf16.mxu0 %vm1090_vm0, %v1089_v2 }
  0x1d   :  { %26 = vsyncpa [#allocation4], 0  ;;  %v886_v13 = vld [vmem:[#allocation2] ss:$0 sm:$0xff]  ;;  %v1091_v14 = vmov 0   ;;  %v229_v17 = vlaneseq  ;;  %s1433_s25 = sld [smem:[#allocation9_spill]] }
  0x1e   :  { %1033 = vset.pattern.permute.xlu1 %v1091_v14  ;;  %1034 = vset.pattern.permute.xlu0 %v1091_v14  ;;  %v1092_v15 = vmov 1966171168   ;;  %v881_v20 = vld [vmem:[%s1409_s5] ss:$0 sm:$0xff]  ;;  %vm299_vm3 = vcmask 1041409   ;;  %vm302_vm4 = vcmask 58368  }
  0x1f   :  { %282 = vperm.xlu1 %1033, %v886_v13   ;;  %v227_v16 = vunpack.c.l.s4 %v1092_v15  ;;  %v1251_v19 = vshrl.u32 %v229_v17, 7  ;;  %v885_v43 = vld [vmem:[%s1410_s6] ss:$0 sm:$0xff]  ;;  %v290_v51 = vand.u32 127, %v229_v17 }
  0x21   :  { %v228_v18 = vunpack.c.0.s8 %v227_v16  ;;  %v1261_v30 = vsub.s32 0, %v1251_v19  ;;  %v293_v54 = vsub.s32 %v290_v51, %v1251_v19  ;;  %v313_v62 = vsub.s32 1, %v1251_v19 }
  0x23   :  { %v231_v23 = vsub.s32 %v228_v18, %v1251_v19  ;;  %v875_v29 = vld [vmem:[%s1433_s25] ss:$0 sm:$0xff]  ;;  %v384_v18 = vsel %vm110_vm2, %v1232_v10, 0.0  ;;  %v1049_v19 = vld [vmem:[%s1414_s10 + $0x10] sm:$0xff]  }
  0x9e   :  { %v283_v52 = vpop.permute.xlu1 %282 }
  0xe2   :  { %v218_v21 = vpop.f32.mrb[0].mxu1 }
  0xe3   :  { %v219_v22 = vadd.f32 %v881_v20, %v218_v21  ;;  %v966_v24 = vpop.f32.mrb[1].mxu1  ;;  %v391_v20 = vsel %vm110_vm2, %v1237_v11, 0.0  ;;  %v385_v21 = vrot.slane %v384_v18, 4 }
  0xe4   :  { %v221_v25 = vpop.f32.mrb[2].mxu1 }
  0xe5   :  { %v224_v26 = vmax.f32 %v219_v22, 0.0  ;;  %v967_v27 = vpop.f32.mrb[3].mxu1  ;;  %v392_v22 = vrot.slane %v391_v20, 4 }
  0xe7   :  { %v232_v28 = vrot.slane %v224_v26, %v231_v23  ;;  %v393_v24 = vadd.f32 %v392_v22, %v391_v20 }
  0xe9   :  { %v233_v31 = vcombine.high %v232_v28, %v232_v28  ;;  %v240_v32 = vrot.slane %v232_v28, %v231_v23  ;;  %v394_v26 = vrot.slane %v393_v24, 2 }
  0xeb   :  { %v251_v36 = vrot.slane %v240_v32, %v1261_v30  ;;  %v247_v38 = vrot.slane %v233_v31, %v231_v23  ;;  %v386_v23 = vadd.f32 %v385_v21, %v384_v18  ;;  %v395_v28 = vadd.f32 %v394_v26, %v393_v24  ;;  %v1041_v32 = vld [vmem:[%s1412_s8] sm:$0xff]  }
  0xec   :  { %969 = vmatpush3.bf16.msra.mxu1 %v1041_v32 }
  0xed   :  { %v255_v42 = vrot.slane %v247_v38, %v1261_v30  ;;  %v387_v25 = vrot.slane %v386_v23, 2  ;;  %v396_v31 = vrot.slane %v395_v28, 1  ;;  %970 = vmatprep.subr.bf16.mxu1 %v1089_v2  ;;  %v1043_v38 = vld [vmem:[%s1416_s12] sm:$0xff]  }
  0xee   :  { %v148_v33 = vpop.f32.mrb[0].mxu0 }
  0xef   :  { %v149_v34 = vadd.f32 %v875_v29, %v148_v33  ;;  %v958_v35 = vpop.f32.mrb[1].mxu0  ;;  %v388_v27 = vadd.f32 %v387_v25, %v386_v23 }
  0xf0   :  { %v151_v37 = vpop.f32.mrb[2].mxu0  ;;  %v1042_v35 = vld [vmem:[%s1412_s8 + $0x8] sm:$0xff]  }
  0xf1   :  { %v155_v39 = vmax.f32 %v149_v34, 0.0  ;;  %v152_v40 = vadd.f32 %v875_v29, %v151_v37  ;;  %v959_v41 = vpop.f32.mrb[3].mxu0  ;;  %v389_v29 = vrot.slane %v388_v27, 1  ;;  %v397_v34 = vadd.f32 %v396_v31, %v395_v28  ;;  %971 = vmatpush3.bf16.msra.mxu1 %v1042_v35 }
  0xf2   :  { %988 = vmatprep.subr.bf16.mxu1 %v1089_v2  ;;  %v1044_v41 = vld [vmem:[%s1416_s12 + $0x8] sm:$0xff]  }
  0xf3   :  { %v258_v44 = vmul.f32 %v251_v36, %v155_v39  ;;  %v156_v45 = vmax.f32 %v152_v40, 0.0  ;;  %v390_v33 = vadd.f32 %v389_v29, %v388_v27  ;;  %v399_v37 = vmul.f32 0.125, %v397_v34 }
  0xf4   :  { %973 = vmatmul.mubr.msk.bf16.vlgmr.msra.gmra.mrb[4].mxu1 %vm180_vm1, %v1220_v7 }
  0xf5   :  { %v259_v46 = vmul.f32 %v255_v42, %v156_v45  ;;  %v267_v47 = vmul.f32 %v885_v43, %v258_v44  ;;  %v398_v36 = vmul.f32 0.125, %v390_v33  ;;  %v556_v40 = vpack.c.bf16 %v399_v37, %v399_v37  ;;  %989 = vmatpush3.bf16.msra.mxu1 %v1043_v38  ;;  %996 = vmatprep.mubr.msk.bf16.mxu1 %vm1090_vm0, %v1089_v2  ;;  %v1045_v44 = vld [vmem:[%s1416_s12 + $0x10] sm:$0xff]   ;;  %v1046_v45 = vld [vmem:[%s1416_s12 + $0x18] sm:$0xff]   ;;  %v1053_v37 = vld [vmem:[%s1418_s14] sm:$0xff]  }
  0xf6   :  { %990 = vmatprep.subr.bf16.mxu1 %v1089_v2  ;;  %v1054_v38 = vld [vmem:[%s1418_s14 + $0x8] sm:$0xff]  }
  0xf7   :  { %v269_v48 = vsel %vm180_vm1, %v267_v47, 0.0  ;;  %v268_v49 = vmul.f32 %v885_v43, %v259_v46  ;;  %v555_v39 = vpack.c.bf16 %v398_v36, %v398_v36  ;;  %v575_v43 = vunpack.c.l.b16 %v556_v40  ;;  %v1056_v40 = vld [vmem:[%s1421_s17 + $0x8] sm:$0xff]  }
  0xf8   :  { %270 = vadd.xlane.f32.xlu0 %v269_v48 }
  0xf9   :  { %v272_v50 = vsel %vm180_vm1, %v268_v49, 0.0  ;;  %v574_v42 = vunpack.c.l.b16 %v555_v39  ;;  %991 = vmatpush3.bf16.msra.mxu1 %v1044_v41  ;;  %v1055_v39 = vld [vmem:[%s1421_s17] sm:$0xff]  }
  0xfa   :  { %992 = vmatprep.subr.bf16.mxu1 %v1089_v2 }
  0xfb   :  { %v576_v7 = vsel %vm299_vm3, %v575_v43, %v574_v42 }
  0xfc   :  { %273 = vadd.xlane.f32.xlu0 %v272_v50  ;;  %v577_v46 = vpack.c.b16 %v576_v7, %v576_v7  ;;  %v891_v7 = vld [vmem:[%s1415_s11] ss:$0 sm:$0xff] }
  0xfd   :  { %993 = vmatpush3.bf16.msra.mxu1 %v1045_v44 }
  0xfe   :  { %994 = vmatprep.subr.bf16.mxu1 %v1089_v2 }
 0x101   :  { %995 = vmatpush3.bf16.msra.mxu1 %v1046_v45 }
 0x102   :  { %1000 = vmatprep.subr.bf16.mxu1 %v1089_v2 }
 0x104   :  { %997 = vmatmul.mubr.msk.bf16.vlgmr.msra.gmra.mrb[8].mxu1 %vm110_vm2, %v577_v46 }
 0x105   :  { %1004 = vmatprep.mubr.msk.bf16.mxu1 %vm1090_vm0, %v1089_v2 }
 0x185   :  { %v271_v53 = vpop.xlane.xlu0 %270 }
 0x186   :  { %v285_v55 = vadd.f32 %v283_v52, %v271_v53  ;;  %v1047_v53 = vld [vmem:[%s1414_s10] sm:$0xff]  }
 0x187   :  { %977 = vmatpush3.bf16.msra.mxu0 %v1047_v53  ;;  %v1057_v53 = vld [vmem:[%s1421_s17 + $0x10] sm:$0xff]  }
 0x188   :  { %v294_v58 = vrot.slane %v285_v55, %v293_v54  ;;  %978 = vmatprep.subr.bf16.mxu0 %v1089_v2 }
 0x189   :  { %v274_v56 = vpop.xlane.xlu0 %273 }
 0x18a   :  { %v286_v57 = vadd.f32 %v283_v52, %v274_v56  ;;  %v1052_v56 = vld [vmem:[%s1419_s15 + $0x8] sm:$0xff]  }
 0x18c   :  { %v298_v59 = vrot.slane %v286_v57, %v293_v54 }
 0x18e   :  { %v300_v60 = vsel %vm299_vm3, %v298_v59, %v294_v58 }
 0x18f   :  { %v303_v61 = vsel %vm302_vm4, %v300_v60, -inf }
 0x190   :  { %304 = vmax.xlane.f32.xlu1 %v303_v61  ;;  %v887_v61 = vld [vmem:[%s1413_s9] ss:$0 sm:$0xff] }
 0x21d   :  { %v305_v63 = vpop.xlane.xlu1 %304 }
 0x21e   :  { %v310_v0 = vrot.slane %v305_v63, %v1261_v30  ;;  %v314_v1 = vrot.slane %v305_v63, %v313_v62  ;;  %v897_v63 = vld [vmem:[%s1417_s13] ss:$0 sm:$0xff] }
 0x220   :  { %v317_v3 = vsub.f32 %v285_v55, %v310_v0  ;;  %v318_v4 = vsub.f32 %v286_v57, %v314_v1  ;;  %v1051_v55 = vld [vmem:[%s1419_s15] sm:$0xff]   ;;  %v457_v57 = vpop.f32.mrb[4].mxu1 }
 0x221   :  { %1001 = vmatpush3.bf16.msra.mxu1 %v1051_v55  ;;  %v974_v58 = vpop.f32.mrb[5].mxu1 }
 0x222   :  { %v319_v5 = vmul.f32 1.442695, %v317_v3  ;;  %v321_v6 = vmul.f32 1.442695, %v318_v4  ;;  %1002 = vmatprep.subr.bf16.mxu1 %v1089_v2  ;;  %v460_v59 = vpop.f32.mrb[6].mxu1 }
 0x223   :  { %v975_v60 = vpop.f32.mrb[7].mxu1 }
 0x224   :  { %1059 = vpow2.f32 %v319_v5  ;;  %v639_v0 = vpop.f32.mrb[8].mxu1 }
 0x225   :  { %1061 = vpow2.f32 %v321_v6  ;;  %1003 = vmatpush3.bf16.msra.mxu1 %v1052_v56  ;;  %v640_v3 = vadd.f32 %v897_v63, %v639_v0  ;;  %v998_v4 = vpop.f32.mrb[9].mxu1 }
 0x226   :  { %1008 = vmatprep.subr.bf16.mxu1 %v1089_v2  ;;  %v642_v5 = vpop.f32.mrb[10].mxu1 }
 0x227   :  { %v645_v6 = vmax.f32 %v640_v3, 0.0 }
 0x22e   :  { %v1060_v8 = vpop.eup %1059 }
 0x22f   :  { %v1062_v9 = vpop.eup %1061  ;;  %326 = vperm.xlu0 %1034, %v1060_v8  }
 0x230   :  { %329 = vperm.xlu1 %1033, %v1062_v9  }
 0x2ae   :  { %v327_v12 = vpop.permute.xlu0 %326 }
 0x2af   :  { %v330_v13 = vpop.permute.xlu1 %329  ;;  %v334_v14 = vrot.slane %v327_v12, %v293_v54 }
 0x2b0   :  { %v338_v15 = vrot.slane %v330_v13, %v293_v54  ;;  %v1048_v54 = vld [vmem:[%s1414_s10 + $0x8] sm:$0xff]  }
 0x2b1   :  { %979 = vmatpush3.bf16.msra.mxu0 %v1048_v54  ;;  %v1058_v54 = vld [vmem:[%s1421_s17 + $0x18] sm:$0xff]   ;;  %s1093_s17 = smov [#allocation3]  }
 0x2b2   :  { %v339_v16 = vsel %vm299_vm3, %v338_v15, %v334_v14  ;;  %980 = vmatprep.subr.bf16.mxu0 %v1089_v2  ;;  %s867_s5 = sshll.u32 %s1093_s17, 4  ;;  %s868_s5 = int_to_ptr.vmem [resolvable:$true] %s867_s5 }
 0x2b3   :  { %v341_v17 = vsel %vm302_vm4, %v339_v16, 0.0  ;;  %p1070_p1 = scmp.lt.s32.totalorder %s868_s5, %s868_s5 }
 0x2b4   :  { %342 = vadd.xlane.f32.xlu0 %v341_v17 }
 0x2b5   :  { %981 = vmatpush3.bf16.msra.mxu0 %v1049_v19 }
 0x2b6   :  { %982 = vmatprep.subr.bf16.mxu0 %v1089_v2 }
 0x341   :  { %v343_v47 = vpop.xlane.xlu0 %342 }
 0x342   :  { %1063 = vrcp.f32 %v343_v47 }
 0x34c   :  { %v1064_v48 = vpop.eup %1063 }
 0x34d   :  { %v349_v49 = vrot.slane %v1064_v48, %v1261_v30  ;;  %v353_v51 = vrot.slane %v1064_v48, %v313_v62  ;;  %v1050_v30 = vld [vmem:[%s1414_s10 + $0x18] sm:$0xff]   ;;  %v458_v62 = vadd.f32 %v887_v61, %v457_v57 }
 0x34e   :  { %983 = vmatpush3.bf16.msra.mxu0 %v1050_v30  ;;  %v909_v30 = vld [vmem:[%s1420_s16] ss:$0 sm:$0xff]  ;;  %s1065_s16 = scalar_lea.vmem %s868_s5, 32 }
 0x34f   :  { %v356_v50 = vmul.f32 %v1060_v8, %v349_v49  ;;  %v357_v52 = vmul.f32 %v1062_v9, %v353_v51  ;;  %1016 = vmatprep.subr.bf16.mxu0 %v1089_v2  ;;  %v463_v1 = vmax.f32 %v458_v62, 0.0  ;;  %v999_v8 = vpop.f32.mrb[11].mxu1  ;;  %p1066_p0 = scmp.ne.s32.totalorder %s868_s5, %s1065_s16  ;;  %p1071_p2 = scmp.lt.s32.totalorder %s1065_s16, %s1065_s16 }
 0x351   :  { %360 = vperm.xlu1 %1033, %v356_v50   ;;  %v647_v9 = vmul.f32 %v645_v6, %v463_v1  ;;  %p1072_p3 = por %p1071_p2, %p1070_p1 }
 0x353   :  { %v653_v12 = vpack.c.bf16 %v647_v9, %v647_v9  ;;  %p1073_p4 = pnand %p1072_p3, %p1066_p0 }
 0x355   :  { %365 = vperm.xlu1 %1033, %v357_v52   ;;  %1005 = vmatmul.mubr.msk.bf16.vlgmr.msra.gmra.mrb[12].mxu1 %vm180_vm1, %v653_v12 }
 0x356   :  { %1012 = vmatprep.mubr.msk.bf16.mxu1 %vm1090_vm0, %v1089_v2  ;;  %1009 = vmatpush3.bf16.msra.mxu1 %v1053_v37 }
 0x357   :  { %1010 = vmatprep.subr.bf16.mxu1 %v1089_v2 }
 0x35a   :  { %1011 = vmatpush3.bf16.msra.mxu1 %v1054_v38 }
 0x3d0   :  { %v361_v13 = vpop.permute.xlu1 %360 }
 0x3d1   :  { %v368_v14 = vmul.f32 %v361_v13, %v1232_v10 }
 0x3d3   :  { %v370_v15 = vsel %vm110_vm2, %v368_v14, 0.0 }
 0x3d4   :  { %v371_v16 = vrot.slane %v370_v15, 4  ;;  %v366_v17 = vpop.permute.xlu1 %365 }
 0x3d5   :  { %v369_v18 = vmul.f32 %v366_v17, %v1237_v11 }
 0x3d6   :  { %v372_v20 = vadd.f32 %v371_v16, %v370_v15 }
 0x3d7   :  { %v377_v21 = vsel %vm110_vm2, %v369_v18, 0.0 }
 0x3d8   :  { %v373_v22 = vrot.slane %v372_v20, 2  ;;  %v378_v23 = vrot.slane %v377_v21, 4 }
 0x3da   :  { %v374_v24 = vadd.f32 %v373_v22, %v372_v20  ;;  %v379_v25 = vadd.f32 %v378_v23, %v377_v21 }
 0x3dc   :  { %v375_v26 = vrot.slane %v374_v24, 1  ;;  %v380_v27 = vrot.slane %v379_v25, 2 }
 0x3de   :  { %v376_v28 = vadd.f32 %v375_v26, %v374_v24  ;;  %v381_v29 = vadd.f32 %v380_v27, %v379_v25 }
 0x3e0   :  { %v382_v31 = vrot.slane %v381_v29, 1  ;;  %v464_v32 = vpack.c.bf16 %v376_v28, %v376_v28 }
 0x3e2   :  { %v383_v10 = vadd.f32 %v382_v31, %v381_v29  ;;  %v483_v34 = vunpack.c.l.b16 %v464_v32 }
 0x3e4   :  { %v465_v33 = vpack.c.bf16 %v383_v10, %v383_v10 }
 0x3e6   :  { %v484_v35 = vunpack.c.l.b16 %v465_v33 }
 0x3e8   :  { %v485_v36 = vsel %vm299_vm3, %v484_v35, %v483_v34 }
 0x3e9   :  { %v486_v11 = vpack.c.b16 %v485_v36, %v485_v36 }
 0x3eb   :  { %985 = vmatmul.mubr.msk.bf16.vlgmr.msra.gmra.mrb[4].mxu0 %vm110_vm2, %v486_v11 }
 0x3ec   :  { %1024 = vmatprep.mubr.msk.bf16.mxu0 %vm1090_vm0, %v1089_v2  ;;  %1017 = vmatpush3.bf16.msra.mxu0 %v1055_v39 }
 0x3ed   :  { %1018 = vmatprep.subr.bf16.mxu0 %v1089_v2 }
 0x3f0   :  { %1019 = vmatpush3.bf16.msra.mxu0 %v1056_v40 }
 0x3f1   :  { %1020 = vmatprep.subr.bf16.mxu0 %v1089_v2 }
 0x3f4   :  { %1021 = vmatpush3.bf16.msra.mxu0 %v1057_v53 }
 0x3f5   :  { %1022 = vmatprep.subr.bf16.mxu0 %v1089_v2  ;;  %v910_v2 = vld [vmem:[%s1422_s18] ss:$0 sm:$0xff] }
 0x3f8   :  { %1023 = vmatpush3.bf16.msra.mxu0 %v1058_v54 }
 0x428   :  { %v707_v41 = vpop.f32.mrb[12].mxu1 }
 0x429   :  { %v1006_v42 = vpop.f32.mrb[13].mxu1 }
 0x42a   :  { %v710_v43 = vpop.f32.mrb[14].mxu1 }
 0x42b   :  { %v1007_v44 = vpop.f32.mrb[15].mxu1 }
 0x4be   :  { %v548_v45 = vpop.f32.mrb[4].mxu0 }
 0x4bf   :  { %v549_v46 = vadd.f32 %v891_v7, %v548_v45  ;;  %v986_v47 = vpop.f32.mrb[5].mxu0 }
 0x4c0   :  { %v551_v48 = vpop.f32.mrb[6].mxu0 }
 0x4c1   :  { %v554_v49 = vmax.f32 %v549_v46, 0.0  ;;  %v987_v50 = vpop.f32.mrb[7].mxu0 }
 0x4c3   :  { %v646_v51 = vmul.f32 %v554_v49, %v463_v1 }
 0x4c5   :  { %v648_v52 = vpack.c.bf16 %v646_v51, %v646_v51 }
 0x4c7   :  { %1013 = vmatmul.mubr.msk.bf16.vlgmr.msra.gmra.mrb[16].mxu1 %vm180_vm1, %v648_v52 }
 0x59a   :  { %v762_v19 = vpop.f32.mrb[16].mxu1 }
 0x59b   :  { %v763_v55 = vadd.f32 %v762_v19, %v707_v41  ;;  %v1014_v56 = vpop.f32.mrb[17].mxu1 }
 0x59c   :  { %v765_v57 = vpop.f32.mrb[18].mxu1 }
 0x59d   :  { %v775_v58 = vadd.f32 %v909_v30, %v763_v55  ;;  %v1015_v59 = vpop.f32.mrb[19].mxu1 }
 0x59f   :  { %v776_v60 = vmax.f32 %v775_v58, 0.0 }
 0x5a1   :  { %v777_v61 = vpack.c.bf16 %v776_v60, %v776_v60 }
 0x5a3   :  { %1025 = vmatmul.mubr.msk.bf16.vlgmr.msra.gmra.mrb[8].mxu0 %vm110_vm2, %v777_v61 }
 0x676   :  { %v854_v62 = vpop.f32.mrb[8].mxu0 }
 0x677   :  { %v855_v63 = vadd.f32 %v910_v2, %v854_v62  ;;  %v1026_v0 = vpop.f32.mrb[9].mxu0 }
 0x678   :  { %v857_v1 = vpop.f32.mrb[10].mxu0 }
 0x679   :  { %860 = vst [vmem:[#allocation3] sm:$0x3] %v855_v63  ;;  %v1027_v3 = vpop.f32.mrb[11].mxu0 }
 0x67a   :  { %1076 = shalt.err (!%p1073_p4)
}
 0x67b   :  { %s1077_s18 = scalar_lea.hbm %s1423_s19, 32 }
 0x67c   :  { %p1078_p5 = scmp.ne.s32.totalorder %s1423_s19, %s1077_s18  ;;  %p1081_p6 = scmp.lt.u32.totalorder %s1077_s18, %s1423_s19 }
 0x67e   :  { %p1083_p7 = pnand %p1081_p6, %p1078_p5 }
 0x680   :  { %1086 = shalt.err (!%p1083_p7)
}
 0x681   :  { %870 = dma.vmem_to_hbm [thread:$0]  %s868_s5, 32, %s1423_s19, [#allocation4]  }
 0x682   :  { %1087 = dma.done.wait [#allocation4], 32  }
 0x683   :  { %1088 = vsyncadd [#allocation4], 4294967264 }
 0x684   :  { %874 = vsyncpa [#allocation4], 1 }

</bundles_post_ra>
